<compile_context>
chip_gen: v7x
topology: tpu7x:2x2x1
jax: 0.10.0
libtpu: 0.0.40
codegen_flags: <defaults>
</compile_context>

<pallas_src>
import math
import numpy as np
import jax
import jax.numpy as jnp
from jax.experimental import pallas as pl
from jax.experimental.pallas import tpu as pltpu


# ----------------------------------------------------------------------------
# 'gaus7' wavelet (pywt: 7th derivative-of-Gaussian, unit L2 norm) — computed
# analytically in-script so no pywt / file loads are needed.
# ----------------------------------------------------------------------------
_GAUS7_NORM = math.sqrt(135135.0 * math.sqrt(math.pi / 2.0))  # 13!! * sqrt(pi/2)


def _gaus7_psi(x):
    # physicists' Hermite H7(x) * exp(-x^2), normalized (matches pywt's gaus7)
    h7 = 128 * x**7 - 1344 * x**5 + 3360 * x**3 - 1680 * x
    return h7 * np.exp(-x**2) / _GAUS7_NORM


def _gaus7_wavefun(precision):
    # pywt ContinuousWavelet('gaus7').wavefun: domain [-5, 5], 2**precision points
    x = np.linspace(-5.0, 5.0, 2**precision)
    return _gaus7_psi(x), x


def _central_frequency(precision=8):
    # mirrors pywt.central_frequency
    psi, x = _gaus7_wavefun(precision)
    domain = float(x[-1] - x[0])
    index = int(np.argmax(np.abs(np.fft.fft(psi)[1:]))) + 2
    if index > len(psi) / 2:
        index = len(psi) - index + 2
    return (index - 1) / domain


def _frequency2scale(freqs_normalized):
    # mirrors pywt.frequency2scale('gaus7', f)
    return _central_frequency() / np.asarray(freqs_normalized, dtype=np.float64)


# ----------------------------------------------------------------------------
# Deterministic filter-bank construction (parameter setup / glue).
# Each scale's pywt pipeline
#   coef = center_crop(-sqrt(scale) * diff(convolve(data, int_psi_scale)))
# is folded into one correlation filter H[s, :] so that
#   out[s, n] = sum_q H[s, q] * xpad[n + q].
# ----------------------------------------------------------------------------
def _build_filter_bank(scales, precision=10, lane=128):
    psi, x = _gaus7_wavefun(precision)
    step = x[1] - x[0]
    int_psi = np.cumsum(psi) * step  # pywt.integrate_wavelet

    pieces = []
    for s in scales:
        j = np.arange(s * (x[-1] - x[0]) + 1) / (s * step)
        j = j.astype(int)
        j = j[j < int_psi.size]
        w = int_psi[j][::-1]                  # int_psi_scale, length L
        L = len(w)
        off = (L - 2) // 2                    # crop offset floor((L-2)/2)
        rmin, rmax = off - L + 1, off + 1
        coef = np.zeros(rmax - rmin + 1, dtype=np.float64)
        for k, r in enumerate(range(rmin, rmax + 1)):
            a = w[off + 1 - r] if 0 <= off + 1 - r < L else 0.0
            b = w[off - r] if 0 <= off - r < L else 0.0
            coef[k] = -math.sqrt(s) * (a - b)  # folds np.diff and -sqrt(scale)
        pieces.append((rmin, coef))

    pad_left = max(-rmin for rmin, _ in pieces)
    rmax_g = max(rmin + len(c) - 1 for rmin, c in pieces)
    q_needed = pad_left + rmax_g + 1
    qp = ((q_needed + lane - 1) // lane) * lane  # pad taps to a lane multiple

    H = np.zeros((len(scales), qp), dtype=np.float32)
    for i, (rmin, c) in enumerate(pieces):
        H[i, pad_left + rmin: pad_left + rmin + len(c)] = c
    return H, pad_left, qp


def _round_up(a, m):
    return ((a + m - 1) // m) * m


# ----------------------------------------------------------------------------
# Pallas kernel.
# Per grid cell (output tile j, tap chunk k):
#   1. concatenate the two lane-aligned 128-row shift-stack panels into a
#      (128, 2*T) strip (full-vreg, lane-aligned copies — no rotates);
#   2. run T//128 MXU matmuls with lane-aligned 128-wide slices, accumulating
#      in f32 into the resident output tile;
#   3. on the last tap chunk, fold the per-scale f32 row scale back in.
# ----------------------------------------------------------------------------
def _scalogram_kernel(h_ref, rs_ref, xa_ref, xb_ref, o_ref, strip_ref):
    # h_ref:     (S_pad, T)   row-normalized filter chunk for taps [k*T, (k+1)*T)
    # rs_ref:    (S_pad, 1)   f32 per-scale row scale (applied once, at the end)
    # xa_ref:    (128, T)     shift-stack panel (j + k)     xs[r, c] = xpad[c + r]
    # xb_ref:    (128, T)     shift-stack panel (j + k + 1)
    # o_ref:     (S_pad, T)   f32 output tile j (resident / accumulated across k)
    # strip_ref: (128, 2*T)   VMEM scratch — overlapping signal strip
    k = pl.program_id(1)
    T = xa_ref.shape[1]

    @pl.when(k == 0)
    def _init():
        o_ref[...] = jnp.zeros_like(o_ref)

    # Lane-aligned, full-vreg copies (128 rows => also a multiple of 16 for bf16).
    strip_ref[:, :T] = xa_ref[...]
    strip_ref[:, T:] = xb_ref[...]

    # out[s, n] += sum_c sum_r H_chunk[s, 128c + r] * strip[r, 128c + n]
    # Every slice below starts at a multiple of 128 lanes -> no unaligned shuffles.
    acc = o_ref[...]
    for c in range(T // 128):
        acc += jnp.dot(h_ref[:, 128 * c:128 * (c + 1)],
                       strip_ref[:, 128 * c:128 * c + T],
                       preferred_element_type=jnp.float32)
    o_ref[...] = acc

    @pl.when(k == pl.num_programs(1) - 1)
    def _finalize():
        # fold the per-scale f32 row scale back into the f32 accumulator
        o_ref[...] = o_ref[...] * rs_ref[...]


def scalogram(waveform, filters, pad_left, n_samples=None, *,
              tile_n=2048, compute_dtype=jnp.float32):
    """Pallas implementation of Scalogram.forward.

    out[s, n] = sum_q H[s, q] * xpad[n + q], computed as tiled MXU matmuls against
    lane-aligned slices of a 128-row shift stack of the zero-padded signal (the
    im2col / Toeplitz matrix never exists, on-chip or in HBM).

    compute_dtype=jnp.bfloat16 selects the bf16-operand fast path (f32 MXU
    accumulation, per-scale f32 row scales factored out of H).  Production
    guidance: tile_n=2048 (default); the whole working set is a few MiB.
    """
    assert tile_n % 128 == 0 and tile_n >= 128

    # glue: ravel + truncate (the original module runs pywt.cwt on ravel()[0:140000])
    # TODO(synk): the hard-coded 140000-sample truncation comes straight from the
    # original module; longer inputs are silently truncated there too.
    data = jnp.ravel(waveform)[:140000]
    if n_samples is not None:
        data = data[:n_samples]
    n = int(data.shape[0])
    data = data.astype(jnp.float32)

    filters_np = np.asarray(filters, np.float32)
    s_taps, q_taps = filters_np.shape

    # Pad: scales -> multiple of 16 sublanes (safe for f32 and packed bf16);
    # taps & samples -> multiple of tile_n.
    s_pad = _round_up(s_taps, 16)
    qp = _round_up(q_taps, tile_n)
    n_pad = _round_up(n, tile_n)
    num_j, num_k = n_pad // tile_n, qp // tile_n

    # Per-scale row normalization (re-applied in-kernel on the f32 accumulator):
    # keeps the bf16 operand path accurate and is harmless for f32.
    H = np.zeros((s_pad, qp), np.float32)
    H[:s_taps, :q_taps] = filters_np
    rs_np = np.maximum(np.max(np.abs(H), axis=1, keepdims=True), 1e-30).astype(np.float32)
    h = jnp.asarray(H / rs_np, dtype=compute_dtype)
    rs = jnp.asarray(rs_np, jnp.float32)

    # Zero-padded signal and its 128-row shift stack xs[r, c] = xpad[c + r].
    # Size = 128 * (n_pad + Qp) elements (~74 MB f32 / 37 MB bf16 at the 140000-sample
    # production size) — still tiny next to the ~1.5 GB im2col it replaces.
    L = n_pad + qp
    xpad = jnp.zeros((L + 128,), jnp.float32).at[pad_left:pad_left + n].set(data)
    xs = jnp.stack([xpad[r:r + L] for r in range(128)], axis=0).astype(compute_dtype)

    itemsize = int(np.dtype(compute_dtype).itemsize)

    # VMEM budget from actual buffer sizes (double-buffered inputs/outputs + scratch),
    # with headroom, capped well below v7x's 64 MiB per-core VMEM.
    h_b = s_pad * tile_n * itemsize
    rs_b = s_pad * 128 * 4
    panel_b = 128 * tile_n * itemsize
    out_b = s_pad * tile_n * 4
    strip_b = 128 * 2 * tile_n * itemsize
    need = 2 * (h_b + rs_b + 2 * panel_b + out_b) + strip_b
    vmem_limit = int(min(max(need + (2 << 20), 16 << 20), 32 << 20))
    vmem_limit = int(max(vmem_limit, need + (2 << 20)))

    cost = pl.CostEstimate(
        flops=2 * s_pad * qp * n_pad,
        transcendentals=0,
        bytes_accessed=int(num_j * num_k * (s_pad + 2 * 128) * tile_n * itemsize
                           + s_pad * n_pad * 4),
    )

    out = pl.pallas_call(
        _scalogram_kernel,
        out_shape=jax.ShapeDtypeStruct((s_pad, n_pad), jnp.float32),
        grid_spec=pltpu.PrefetchScalarGridSpec(
            num_scalar_prefetch=0,
            grid=(num_j, num_k),                                       # (out tile, tap chunk)
            in_specs=[
                pl.BlockSpec((s_pad, tile_n), lambda j, k: (0, k)),        # H chunk
                pl.BlockSpec((s_pad, 1), lambda j, k: (0, 0)),             # row scales
                pl.BlockSpec((128, tile_n), lambda j, k: (0, j + k)),      # panel A
                pl.BlockSpec((128, tile_n), lambda j, k: (0, j + k + 1)),  # panel B
            ],
            out_specs=pl.BlockSpec((s_pad, tile_n), lambda j, k: (0, j)),
            scratch_shapes=[
                pltpu.VMEM((128, 2 * tile_n), compute_dtype),   # overlapping strip
            ],
        ),
        compiler_params=pltpu.CompilerParams(
            dimension_semantics=("parallel", "arbitrary"),
            vmem_limit_bytes=vmem_limit,
        ),
        cost_estimate=cost,
    )(h, rs, xs, xs)

    # Crop the scale-padding rows and the sample-padding columns.
    return out[:s_taps, :n]


# ----------------------------------------------------------------------------
# NumPy reference reproducing pywt.cwt semantics (conv == fft method) exactly.
# ----------------------------------------------------------------------------
def cwt_reference(data, scales, precision=10):
    psi, x = _gaus7_wavefun(precision)
    step = x[1] - x[0]
    int_psi = np.cumsum(psi) * step
    N = data.shape[-1]
    out = np.empty((len(scales), N), dtype=np.float64)
    for i, s in enumerate(scales):
        j = np.arange(s * (x[-1] - x[0]) + 1) / (s * step)
        j = j.astype(int)
        j = j[j < int_psi.size]
        w = int_psi[j][::-1]
        conv = np.convolve(data, w)
        coef = -np.sqrt(s) * np.diff(conv)
        d = (coef.shape[-1] - N) / 2.0
        out[i] = coef[int(np.floor(d)): coef.shape[-1] - int(np.ceil(d))]
    return out


if __name__ == "__main__":
    fs = 44100
    # Small analysis grid consistent with the module's
    # pywt.frequency2scale('gaus7', np.arange(...)/44100) setup:
    #   * 9 frequencies  -> exercises the scale padding path (9 -> 16 rows)
    #   * 1000 samples   -> not a multiple of tile_n, exercises N pad/crop
    #   * filter support > tile_n -> exercises multi-chunk accumulation.
    freqs_hz = np.arange(150, 1500, 150)              # 9 scales
    scales = _frequency2scale(freqs_hz / fs)
    n = 1000

    H, pad_left, _ = _build_filter_bank(scales)       # deterministic "weights"

    key = jax.random.PRNGKey(0)
    waveform = jax.random.normal(key, (1, n), dtype=jnp.float32)  # (channels, samples)

    ref = cwt_reference(np.asarray(waveform).ravel()[:n].astype(np.float64), scales)
    ref_max = np.max(np.abs(ref)) + 1e-12

    # f32 path, small tile: multi-j / multi-k grid.
    coefs = jax.block_until_ready(
        scalogram(waveform, H, pad_left, n, tile_n=512, compute_dtype=jnp.float32))
    assert coefs.shape == (len(scales), n) and coefs.dtype == jnp.float32
    rel32 = float(np.max(np.abs(np.asarray(coefs) - ref)) / ref_max)
    assert rel32 < 1e-3, f"f32 tile_n=512 max relative error {rel32}"

    # f32 path, production-style tile size (single output tile, 2 tap chunks).
    coefs_big = jax.block_until_ready(
        scalogram(waveform, H, pad_left, n, tile_n=2048, compute_dtype=jnp.float32))
    rel_big = float(np.max(np.abs(np.asarray(coefs_big) - ref)) / ref_max)
    assert rel_big < 1e-3, f"f32 tile_n=2048 max relative error {rel_big}"

    # bf16 operand fast path (f32 MXU accumulation, per-scale f32 row scales):
    # ~2x lighter DMA/copies and higher MXU rate; validated at the accuracy the
    # bf16-cast signal can actually deliver.
    coefs_bf16 = jax.block_until_ready(
        scalogram(waveform, H, pad_left, n, tile_n=512, compute_dtype=jnp.bfloat16))
    rel_bf16 = float(np.max(np.abs(np.asarray(coefs_bf16) - ref)) / ref_max)
    assert rel_bf16 < 3e-2, f"bf16 max relative error {rel_bf16}"

    # TODO(synk): the original module returns float64 (numpy/pywt) coefficients;
    # the TPU kernel emits float32 (f32 MXU accumulation), optionally from bf16
    # operands.
    print("KERNEL_OK")
</pallas_src>

<mosaic_0001>
module attributes {stable_mosaic.version = 11 : i64} {
  func.func @_scalogram_kernel(%arg0: i32, %arg1: i32, %arg2: memref<16x512xf32, #tpu.memory_space<vmem>>, %arg3: memref<16x1xf32, #tpu.memory_space<vmem>>, %arg4: memref<128x512xf32, #tpu.memory_space<vmem>>, %arg5: memref<128x512xf32, #tpu.memory_space<vmem>>, %arg6: memref<16x512xf32, #tpu.memory_space<vmem>>, %arg7: memref<128x1024xf32, #tpu.memory_space<vmem>>) attributes {dimension_semantics = [#tpu.dimension_semantics<parallel>, #tpu.dimension_semantics<arbitrary>], iteration_bounds = array<i64: 2, 4>, scalar_prefetch = 0 : i64, scratch_operands = 1 : i64, tpu.core_type = #tpu.core_type<tc>, window_params = [{transform_indices = @transform_0, window_bounds = array<i64: 16, 512>}, {pipeline_mode = #tpu.pipeline_mode<synchronous>, transform_indices = @transform_1, window_bounds = array<i64: 16, 1>}, {transform_indices = @transform_2, window_bounds = array<i64: 128, 512>}, {transform_indices = @transform_3, window_bounds = array<i64: 128, 512>}, {transform_indices = @transform_4, window_bounds = array<i64: 16, 512>}]} {
    %c0_i32 = arith.constant 0 : i32
    %0 = arith.cmpi eq, %arg1, %c0_i32 : i32
    %1 = arith.extui %0 : i1 to i32
    %c0_i32_0 = arith.constant 0 : i32
    %2 = arith.cmpi ne, %1, %c0_i32_0 : i32
    scf.if %2 {
      %cst_28 = arith.constant 0.000000e+00 : f32
      %28 = vector.broadcast %cst_28 : f32 to vector<16x512xf32>
      %c0_29 = arith.constant 0 : index
      %c0_30 = arith.constant 0 : index
      %29 = vector.load %arg6[%c0_29, %c0_30] : memref<16x512xf32, #tpu.memory_space<vmem>>, vector<16x512xf32>
      tpu.vector_store %arg6[%c0_29, %c0_30], %28 {strides = array<i32>} : memref<16x512xf32, #tpu.memory_space<vmem>>, vector<16x512xf32>,
    } else {
    }
    %c0 = arith.constant 0 : index
    %c0_1 = arith.constant 0 : index
    %3 = vector.load %arg4[%c0, %c0_1] : memref<128x512xf32, #tpu.memory_space<vmem>>, vector<128x512xf32>
    %c0_2 = arith.constant 0 : index
    %c0_3 = arith.constant 0 : index
    %4 = vector.load %arg7[%c0_2, %c0_3] : memref<128x1024xf32, #tpu.memory_space<vmem>>, vector<128x512xf32>
    tpu.vector_store %arg7[%c0_2, %c0_3], %3 {strides = array<i32>} : memref<128x1024xf32, #tpu.memory_space<vmem>>, vector<128x512xf32>,
    %c0_4 = arith.constant 0 : index
    %c0_5 = arith.constant 0 : index
    %5 = vector.load %arg5[%c0_4, %c0_5] : memref<128x512xf32, #tpu.memory_space<vmem>>, vector<128x512xf32>
    %c0_6 = arith.constant 0 : index
    %c512 = arith.constant 512 : index
    %6 = vector.load %arg7[%c0_6, %c512] : memref<128x1024xf32, #tpu.memory_space<vmem>>, vector<128x512xf32>
    tpu.vector_store %arg7[%c0_6, %c512], %5 {strides = array<i32>} : memref<128x1024xf32, #tpu.memory_space<vmem>>, vector<128x512xf32>,
    %c0_7 = arith.constant 0 : index
    %c0_8 = arith.constant 0 : index
    %7 = vector.load %arg6[%c0_7, %c0_8] : memref<16x512xf32, #tpu.memory_space<vmem>>, vector<16x512xf32>
    %c0_9 = arith.constant 0 : index
    %c0_10 = arith.constant 0 : index
    %8 = vector.load %arg2[%c0_9, %c0_10] : memref<16x512xf32, #tpu.memory_space<vmem>>, vector<16x128xf32>
    %c0_11 = arith.constant 0 : index
    %c0_12 = arith.constant 0 : index
    %9 = vector.load %arg7[%c0_11, %c0_12] : memref<128x1024xf32, #tpu.memory_space<vmem>>, vector<128x512xf32>
    %cst = arith.constant dense<0.000000e+00> : vector<16x512xf32>
    %10 = tpu.matmul %8, %9, %cst {dimension_numbers = #tpu.dot_dimension_numbers<[1], [0], [0], [1], [0, 0, 1, 1], [], []>} : vector<16x128xf32>, vector<128x512xf32>, vector<16x512xf32> -> vector<16x512xf32>
    %11 = arith.addf %7, %10 : vector<16x512xf32>
    %c0_13 = arith.constant 0 : index
    %c128 = arith.constant 128 : index
    %12 = vector.load %arg2[%c0_13, %c128] : memref<16x512xf32, #tpu.memory_space<vmem>>, vector<16x128xf32>
    %c0_14 = arith.constant 0 : index
    %c128_15 = arith.constant 128 : index
    %13 = vector.load %arg7[%c0_14, %c128_15] : memref<128x1024xf32, #tpu.memory_space<vmem>>, vector<128x512xf32>
    %cst_16 = arith.constant dense<0.000000e+00> : vector<16x512xf32>
    %14 = tpu.matmul %12, %13, %cst_16 {dimension_numbers = #tpu.dot_dimension_numbers<[1], [0], [0], [1], [0, 0, 1, 1], [], []>} : vector<16x128xf32>, vector<128x512xf32>, vector<16x512xf32> -> vector<16x512xf32>
    %15 = arith.addf %11, %14 : vector<16x512xf32>
    %c0_17 = arith.constant 0 : index
    %c256 = arith.constant 256 : index
    %16 = vector.load %arg2[%c0_17, %c256] : memref<16x512xf32, #tpu.memory_space<vmem>>, vector<16x128xf32>
    %c0_18 = arith.constant 0 : index
    %c256_19 = arith.constant 256 : index
    %17 = vector.load %arg7[%c0_18, %c256_19] : memref<128x1024xf32, #tpu.memory_space<vmem>>, vector<128x512xf32>
    %cst_20 = arith.constant dense<0.000000e+00> : vector<16x512xf32>
    %18 = tpu.matmul %16, %17, %cst_20 {dimension_numbers = #tpu.dot_dimension_numbers<[1], [0], [0], [1], [0, 0, 1, 1], [], []>} : vector<16x128xf32>, vector<128x512xf32>, vector<16x512xf32> -> vector<16x512xf32>
    %19 = arith.addf %15, %18 : vector<16x512xf32>
    %c0_21 = arith.constant 0 : index
    %c384 = arith.constant 384 : index
    %20 = vector.load %arg2[%c0_21, %c384] : memref<16x512xf32, #tpu.memory_space<vmem>>, vector<16x128xf32>
    %c0_22 = arith.constant 0 : index
    %c384_23 = arith.constant 384 : index
    %21 = vector.load %arg7[%c0_22, %c384_23] : memref<128x1024xf32, #tpu.memory_space<vmem>>, vector<128x512xf32>
    %cst_24 = arith.constant dense<0.000000e+00> : vector<16x512xf32>
    %22 = tpu.matmul %20, %21, %cst_24 {dimension_numbers = #tpu.dot_dimension_numbers<[1], [0], [0], [1], [0, 0, 1, 1], [], []>} : vector<16x128xf32>, vector<128x512xf32>, vector<16x512xf32> -> vector<16x512xf32>
    %23 = arith.addf %19, %22 : vector<16x512xf32>
    %c0_25 = arith.constant 0 : index
    %c0_26 = arith.constant 0 : index
    %24 = vector.load %arg6[%c0_25, %c0_26] : memref<16x512xf32, #tpu.memory_space<vmem>>, vector<16x512xf32>
    tpu.vector_store %arg6[%c0_25, %c0_26], %23 {strides = array<i32>} : memref<16x512xf32, #tpu.memory_space<vmem>>, vector<16x512xf32>,
    %c3_i32 = arith.constant 3 : i32
    %25 = arith.cmpi eq, %arg1, %c3_i32 : i32
    %26 = arith.extui %25 : i1 to i32
    %c0_i32_27 = arith.constant 0 : i32
    %27 = arith.cmpi ne, %26, %c0_i32_27 : i32
    scf.if %27 {
      %c0_28 = arith.constant 0 : index
      %c0_29 = arith.constant 0 : index
      %28 = vector.load %arg6[%c0_28, %c0_29] : memref<16x512xf32, #tpu.memory_space<vmem>>, vector<16x512xf32>
      %c0_30 = arith.constant 0 : index
      %c0_31 = arith.constant 0 : index
      %29 = vector.load %arg3[%c0_30, %c0_31] : memref<16x1xf32, #tpu.memory_space<vmem>>, vector<16x1xf32>
      %30 = vector.broadcast %29 : vector<16x1xf32> to vector<16x512xf32>
      %31 = arith.mulf %28, %30 : vector<16x512xf32>
      %c0_32 = arith.constant 0 : index
      %c0_33 = arith.constant 0 : index
      %32 = vector.load %arg6[%c0_32, %c0_33] : memref<16x512xf32, #tpu.memory_space<vmem>>, vector<16x512xf32>
      tpu.vector_store %arg6[%c0_32, %c0_33], %31 {strides = array<i32>} : memref<16x512xf32, #tpu.memory_space<vmem>>, vector<16x512xf32>,
    } else {
    }
    return
  }
  func.func @transform_0(%arg0: i32, %arg1: i32) -> (i32, i32) {
    %c0_i32 = arith.constant 0 : i32
    %c0_i32_0 = arith.constant 0 : i32
    return %c0_i32, %arg1 : i32, i32
  }
  func.func @transform_1(%arg0: i32, %arg1: i32) -> (i32, i32) {
    %c0_i32 = arith.constant 0 : i32
    %c0_i32_0 = arith.constant 0 : i32
    %c0_i32_1 = arith.constant 0 : i32
    return %c0_i32, %c0_i32_0 : i32, i32
  }
  func.func @transform_2(%arg0: i32, %arg1: i32) -> (i32, i32) {
    %0 = arith.addi %arg0, %arg1 : i32
    %c0_i32 = arith.constant 0 : i32
    %c0_i32_0 = arith.constant 0 : i32
    return %c0_i32, %0 : i32, i32
  }
  func.func @transform_3(%arg0: i32, %arg1: i32) -> (i32, i32) {
    %0 = arith.addi %arg0, %arg1 : i32
    %c1_i32 = arith.constant 1 : i32
    %1 = arith.addi %0, %c1_i32 : i32
    %c0_i32 = arith.constant 0 : i32
    %c0_i32_0 = arith.constant 0 : i32
    return %c0_i32, %1 : i32, i32
  }
  func.func @transform_4(%arg0: i32, %arg1: i32) -> (i32, i32) {
    %c0_i32 = arith.constant 0 : i32
    %c0_i32_0 = arith.constant 0 : i32
    return %c0_i32, %arg0 : i32, i32
  }
}

</mosaic_0001>

<bundles_post_ra>
// kernel: tpu_custom_call.1
= control target key start
LH: loop header
LB: loop body
LE: loop exit
PB: predicated region body
PF: predicated region fallthrough
CT: control target
= control target key end

     0   :  { %s3334_s0 = inlined_call_operand.hbm [shape: f32[16,2048], index: 0, kind: input, shape index: {}]   ;;  %s3335_s1 = inlined_call_operand.vmem [shape: f32[16,1], index: 1, kind: input, shape index: {}]   ;;  %s3336_s2 = inlined_call_operand.hbm [shape: f32[128,3072], index: 2, kind: input, shape index: {}]   ;;  %s3337_s3 = inlined_call_operand.hbm [shape: f32[128,3072], index: 3, kind: input, shape index: {}]   ;;  %s3338_s4 = inlined_call_operand.hbm [shape: f32[16,1024], index: 4, kind: output, shape index: {}]  }
   0x1   :  { %3362 = sst [smem:[#allocation27_spill]] %s3335_s1 }
   0x2   :  { %3363 = sst [smem:[#allocation28_spill]] %s3338_s4 }
   0x3   :  { %9 = vsyncpa [#allocation4], 0 }
   0x4   :  { %11 = vsyncpa [#allocation4 + $0x1], 0 }
   0x5   :  { %12 = vsyncpa [#allocation7], 0 }
   0x6   :  { %14 = vsyncpa [#allocation7 + $0x1], 0 }
   0x7   :  { %15 = vsyncpa [#allocation5], 0 }
   0x8   :  { %17 = vsyncpa [#allocation5 + $0x1], 0  ;;  %s2497_s15 = smov 0   ;;  %s2499_s16 = smov 0  }
   0x9   :  { %s2501_s17 = smov 0   ;;  %s2503_s18 = smov 0  }
   0xa   :  { %s2505_s19 = smov 0   ;;  %s2507_s20 = smov 0  }
   0xb   :  { %s2509_s21 = smov 0   ;;  %s2511_s22 = smov 0  }
   0xc   :  { %s2513_s23 = smov 0   ;;  %s2515_s24 = smov 0  }
   0xd   :  { %s2517_s25 = smov 0   ;;  %s2519_s26 = smov 0  }
   0xe   :  { %s2521_s27 = smov 0   ;;  %s2523_s28 = smov 0  }
   0xf   :  { %s2525_s29 = smov 0   ;;  %s2527_s30 = smov 0  }
  0x10   :  { %s2529_s5 = smov 0  }
  0x11 LB: > { %3364 = sst [smem:[#allocation14_spill]] %s2392_s15  ;;  %s2581_s6 = sadd.s32 4294967295, %s2456_s5   ;;  %s2456_s5 = sphi %s2529_s5, %s23_s5   ;;  %s2452_s30 = sphi %s2527_s30, %s3421_s30   ;;  %s2448_s29 = sphi %s2525_s29, %s3431_s29   ;;  %s2444_s28 = sphi %s2523_s28, %s3419_s28   ;;  %s2440_s27 = sphi %s2521_s27, %s3430_s27   ;;  %s2436_s26 = sphi %s2519_s26, %s3429_s26   ;;  %s2432_s25 = sphi %s2517_s25, %s3428_s25   ;;  %s2428_s24 = sphi %s2515_s24, %s3427_s24   ;;  %s2424_s23 = sphi %s2513_s23, %s3418_s23   ;;  %s2420_s22 = sphi %s2511_s22, %s3417_s22   ;;  %s2416_s21 = sphi %s2509_s21, %s3416_s21   ;;  %s2412_s20 = sphi %s2507_s20, %s3426_s20   ;;  %s2408_s19 = sphi %s2505_s19, %s3425_s19   ;;  %s2404_s18 = sphi %s2503_s18, %s3424_s18   ;;  %s2400_s17 = sphi %s2501_s17, %s3415_s17   ;;  %s2396_s16 = sphi %s2499_s16, %s3423_s16   ;;  %s2392_s15 = sphi %s2497_s15, %s3422_s15  }
  0x12   : > { %3365 = sst [smem:[#allocation15_spill]] %s2400_s17  ;;  %s32_s8 = sadd.s32 1, %s2448_s29 }
  0x13   : > { %3366 = sst [smem:[#allocation16_spill]] %s2420_s22  ;;  %p33_p0 = scmp.ge.s32.totalorder %s32_s8, 4 }
  0x14   : > { %3367 = sst [smem:[#allocation17_spill]] %s2424_s23  ;;  %s35_s9 = sadd.s32 1, %s2452_s30 }
  0x15   : > { %3368 = sst [smem:[#allocation18_spill]] %s2440_s27  ;;  %p3353_p1 = scmp.eq.s32.totalorder %s2456_s5, 0 }
  0x16   : > { %3369 = sst [smem:[#allocation19_spill]] %s2444_s28  ;;  %p3352_p2 = scmp.eq.s32.totalorder %s2581_s6, 0 }
  0x17   : > { %3370 = sst [smem:[#allocation20_spill]] %s2452_s30  ;;  %s3433_s8 = smov (%p33_p0, %s32_s8), 0 }
  0x18   : > { %3371 = sst [smem:[#allocation21_spill]] %s3433_s8  ;;  %s3435_s9 = smov (!%p33_p0, %s35_s9), %s2452_s30 }
  0x19   : > { %s39_s10 = ssub.s32 %s2448_s29, %s3433_s8  ;;  %s2595_s11 = sadd.s32 %s2448_s29, %s2452_s30 }
  0x1a   : > { %p37_p3 = scmp.ge.s32.totalorder %s3435_s9, 2  ;;  %s91_s12 = sadd.s32 1, %s2424_s23 }
  0x1b   : > { %p98_p4 = scmp.ne.s32.totalorder %s2424_s23, %s2420_s22  ;;  %p104_p5 = scmp.ne.s32.totalorder %s2420_s22, %s2416_s21 }
  0x1c   : > { %s3437_s9 = smov (%p37_p3, %s3435_s9), 0  ;;  %p2603_p6 = scmp.eq.s32.totalorder %s39_s10, 0 }
  0x1d   : > { %3372 = sst [smem:[#allocation22_spill]] %s3437_s9  ;;  %p2609_p7 = por %p104_p5, %p3352_p2 }
  0x1e   : > { %s87_s7 = sadd.s32 %s3437_s9, %s3433_s8  ;;  %s115_s21 = sadd.s32 1, %s2595_s11 }
  0x1f   : > { %s3374_s14 = scalar_select %p2609_p7, 1, 0 }
  0x20   : > { %s88_s4 = ssub.s32 %s2595_s11, %s87_s7  ;;  %s117_s28 = sadd.s32 1, %s87_s7 }
  0x21   : > { %3375 = sst [smem:[#allocation23_spill]] %s3374_s14  ;;  %p89_p8 = scmp.eq.s32.totalorder %s88_s4, 0 }
  0x22   : > { %p2619_p9 = por %p98_p4, %p3353_p1  ;;  %s2623_s1 = ssub.s32 %s115_s21, %s117_s28 }
  0x23   : > { %s144_s27 = ssub.s32 %s2452_s30, %s3437_s9  ;;  %s147_s8 = sadd.s32 1, %s2400_s17 }
  0x24   : > { %s2628_s14 = scalar_select %p89_p8, %s2424_s23, %s91_s12  }
  0x25   : > { %p145_p10 = scmp.eq.s32.totalorder %s144_s27, 0  ;;  %p157_p11 = scmp.ne.s32.totalorder %s2400_s17, %s2396_s16 }
  0x26   : > { %3377 = sst [smem:[#allocation24_spill]] %s2628_s14  ;;  %p158_p12 = scmp.eq.s32.totalorder %s2581_s6, 7 }
  0x27   : > { %s2635_s4 = scalar_select %p145_p10, %s2400_s17, %s147_s8  }
  0x28   : > { %p2637_p13 = por %p158_p12, %p157_p11  ;;  %p163_p0 = scmp.ne.s32.totalorder %s2396_s16, %s2392_s15 }
  0x29   : > { %3378 = sst [smem:[#allocation25_spill]] %s2635_s4  ;;  %s3380_s28 = sadd.s32 4294967294, %s2456_s5  }
  0x2a   : > { %s3379_s7 = scalar_select %p2637_p13, 1, 0 }
  0x2b   : > { %p164_p3 = scmp.eq.s32.totalorder %s3380_s28, 7  ;;  %p3351_p4 = scmp.lt.s32.totalorder %s2456_s5, 8 }
  0x2c   : > { %s208_s27 = sand.u32 1, %s2456_s5   ;;  %s210_s21 = sand.u32 1, %s2424_s23  }
  0x2d   : > { %p2646_p5 = por %p164_p3, %p163_p0  ;;  %s1708_s9 = sshll.u32 %s210_s21, 9 }
  0x2e   : > { %s1726_s30 = sshll.u32 %s2595_s11, 9  ;;  %s212_s4 = scalar_lea.vmem [#allocation6], %s1708_s9 }
  0x2f   : > { %s3381_s12 = scalar_select %p2646_p5, 1, 0 }
  0x30   : > { %s2656_s8 = scalar_lea.hbm %s3336_s2, %s1726_s30  ;;  %s220_s28 = sshll.u32 %s212_s4, 4  ;;  %s2658_s28 = int_to_ptr.vmem [resolvable:$true] %s220_s28 }
  0x31   : > { %3382 = sst [smem:[#allocation26_spill]] %s3381_s12  ;;  %p2664_p8 = pnand %p3351_p4, %p2619_p9 }
  0x32   : > { %s2672_s14 = scalar_lea.hbm %s3337_s3, %s1726_s30  ;;  %s2674_s21 = scalar_lea.sflag [#allocation7], %s208_s27 }
  0x33   : > { %s2187_s9 = scalar_lea.hbm %s2656_s8, 8192  ;;  %p2189_p12 = pneg %p2664_p8 }
  0x34   : > { %p2188_p11 = scmp.ne.s32.totalorder %s2656_s8, %s2187_s9  ;;  %s2192_s23 = scalar_lea.hbm %s3336_s2, 49152 }
  0x35   : > { %p2193_p3 = scmp.lt.u32.totalorder %s2656_s8, %s3336_s2  ;;  %p2194_p10 = scmp.lt.u32.totalorder %s2192_s23, %s2187_s9 }
  0x36   : > { %p2190_p9 = pnand %p2189_p12, %p2188_p11  ;;  %p2196_p2 = scmp.lt.u32.totalorder %s2187_s9, %s2656_s8 }
  0x37   : > { %p2195_p4 = por %p2194_p10, %p2193_p3 }
  0x38   : > { %p2191_p0 = pneg %p2190_p9 }
  0x39   : > { %p2197_p1 = por %p2196_p2, %p2195_p4 }
  0x3b   : > { %p2198_p5 = pnand %p2197_p1, %p2191_p0 }
  0x3d   : > { %2201 = shalt.err (!%p2198_p5)
}
  0x3e   : > { %s2202_s30 = scalar_lea.vmem %s2658_s28, 8192  ;;  %s2458_s27 = smov [#allocation6]  }
  0x3f   : > { %p2203_p11 = scmp.ne.s32.totalorder %s2658_s28, %s2202_s30  ;;  %s2207_s22 = sshll.u32 %s2458_s27, 4  ;;  %s2208_s22 = int_to_ptr.vmem [resolvable:$false] %s2207_s22 }
  0x40   : > { %s2209_s15 = scalar_lea.vmem %s2208_s22, 16384  ;;  %p2210_p7 = scmp.lt.s32.totalorder %s2658_s28, %s2208_s22 }
  0x41   : > { %p2205_p9 = pnand %p2203_p11, %p2189_p12  ;;  %p2211_p10 = scmp.lt.s32.totalorder %s2209_s15, %s2202_s30 }
  0x43   : > { %p2206_p13 = pneg %p2205_p9  ;;  %p2212_p3 = por %p2211_p10, %p2210_p7 }
  0x45   : > { %p2213_p2 = pnand %p2212_p3, %p2206_p13 }
  0x47   : > { %2216 = shalt.err (!%p2213_p2)
}
  0x48   : > { %s3356_s23 = smov 3072   ;;  %s3357_s12 = smov 512  }
  0x49   : > { %s3360_s11 = smov 32   ;;  %p1713_p1 = scmp.ge.s32.totalorder %s2456_s5, 1 }
  0x4a   : > { %2030 = dma.hbm_to_vmem [thread:$0]  (!%p2664_p8), %s2656_s8, 8192, %s2658_s28, %s2674_s21, %s3356_s23, %s3357_s12, %s3360_s11  }
  0x4b   : > { %p251_p7 = scmp.lt.s32.totalorder %s2456_s5, 9  ;;  %s42_s10 = sadd.s32 1, %s2436_s26 }
  0x4c   : > { %s2715_s4 = scalar_select %p2603_p6, %s2436_s26, %s42_s10  }
  0x4d   : > { %p2707_p13 = pnand %p1713_p1, %p251_p7  ;;  %p49_p4 = scmp.ne.s32.totalorder %s2436_s26, %s2432_s25 }
  0x4e   : > { %p55_p5 = scmp.ne.s32.totalorder %s2432_s25, %s2428_s24  ;;  %s187_s30 = sand.u32 1, %s2436_s26  }
  0x4f   : > { %s1725_s27 = sshll.u32 %s2448_s29, 9  ;;  %p3385_p12 = scmp.eq.s32.totalorder %s2456_s5, 0 }
  0x50   : > { %p3386_p11 = scmp.eq.s32.totalorder %s2581_s6, 0  ;;  %s1705_s8 = sshll.u32 %s187_s30, 6 }
  0x51   : > { %p51_p0 = por %p3385_p12, %p49_p4  ;;  %s2734_s15 = scalar_lea.hbm %s3334_s0, %s1725_s27 }
  0x52   : > { %p2727_p9 = por %p3386_p11, %p55_p5  ;;  %s191_s24 = scalar_lea.vmem [#allocation3], %s1705_s8 }
  0x53   : > { %s198_s13 = sshll.u32 %s191_s24, 4  ;;  %p3388_p6 = scmp.lt.s32.totalorder %s2456_s5, 8  ;;  %s2742_s13 = int_to_ptr.vmem [resolvable:$true] %s198_s13 }
  0x54   : > { %s3387_s17 = scalar_select %p2727_p9, 1, 0 }
  0x55   : > { %p2738_p8 = pnand %p3388_p6, %p51_p0  ;;  %s2744_s23 = scalar_lea.sflag [#allocation4], %s187_s30 }
  0x56   : > { %s2217_s28 = scalar_lea.hbm %s2734_s15, 1024  ;;  %s2222_s22 = scalar_lea.hbm %s3334_s0, 4096 }
  0x57   : > { %p2218_p10 = scmp.ne.s32.totalorder %s2734_s15, %s2217_s28  ;;  %p2219_p3 = pneg %p2738_p8 }
  0x58   : > { %p2223_p7 = scmp.lt.u32.totalorder %s2734_s15, %s3334_s0  ;;  %p2224_p4 = scmp.lt.u32.totalorder %s2222_s22, %s2217_s28 }
  0x59   : > { %p2220_p2 = pnand %p2219_p3, %p2218_p10  ;;  %p2226_p12 = scmp.lt.u32.totalorder %s2217_s28, %s2734_s15 }
  0x5a   : > { %p2225_p5 = por %p2224_p4, %p2223_p7 }
  0x5b   : > { %p2221_p1 = pneg %p2220_p2 }
  0x5c   : > { %p2227_p0 = por %p2226_p12, %p2225_p5 }
  0x5e   : > { %p2228_p11 = pnand %p2227_p0, %p2221_p1 }
  0x60   : > { %2231 = shalt.err (!%p2228_p11)
}
  0x61   : > { %s2232_s30 = scalar_lea.vmem %s2742_s13, 1024  ;;  %s2462_s27 = smov [#allocation3]  }
  0x62   : > { %p2233_p6 = scmp.ne.s32.totalorder %s2742_s13, %s2232_s30  ;;  %s2237_s8 = sshll.u32 %s2462_s27, 4  ;;  %s2238_s8 = int_to_ptr.vmem [resolvable:$false] %s2237_s8 }
  0x63   : > { %s2239_s12 = scalar_lea.vmem %s2238_s8, 2048  ;;  %p2240_p9 = scmp.lt.s32.totalorder %s2742_s13, %s2238_s8 }
  0x64   : > { %p2235_p10 = pnand %p2233_p6, %p2219_p3  ;;  %p2241_p7 = scmp.lt.s32.totalorder %s2239_s12, %s2232_s30 }
  0x66   : > { %p2236_p2 = pneg %p2235_p10  ;;  %p2242_p4 = por %p2241_p7, %p2240_p9 }
  0x68   : > { %p2243_p5 = pnand %p2242_p4, %p2236_p2 }
  0x6a   : > { %2246 = shalt.err (!%p2243_p5)
}
  0x6b   : > { %s2463_s28 = smov 2048   ;;  %s3390_s22 = smov 512  }
  0x6c   : > { %2027 = dma.hbm_to_vmem [thread:$0]  (!%p2738_p8), %s2734_s15, 1024, %s2742_s13, %s2744_s23, %s2463_s28, %s3390_s22, %s3360_s11  }
  0x6d   : > { %s121_s10 = sadd.s32 1, %s2412_s20  ;;  %p3391_p9 = scmp.eq.s32.totalorder %s2623_s1, 0 }
  0x6e   : > { %p128_p3 = scmp.ne.s32.totalorder %s2412_s20, %s2408_s19  ;;  %p134_p1 = scmp.ne.s32.totalorder %s2408_s19, %s2404_s18 }
  0x6f   : > { %s2778_s24 = scalar_select %p3391_p9, %s2412_s20, %s121_s10  }
  0x70   : > { %s232_s30 = sand.u32 1, %s2412_s20   ;;  %p3392_p12 = scmp.eq.s32.totalorder %s2456_s5, 0 }
  0x71   : > { %p3393_p11 = scmp.eq.s32.totalorder %s2581_s6, 0  ;;  %s2794_s8 = scalar_lea.hbm %s2672_s14, 512 }
  0x72   : > { %p130_p0 = por %p128_p3, %p3392_p12  ;;  %s1711_s23 = sshll.u32 %s232_s30, 9 }
  0x73   : > { %p2789_p6 = por %p134_p1, %p3393_p11  ;;  %p3395_p8 = scmp.lt.s32.totalorder %s2456_s5, 8 }
  0x74   : > { %s234_s18 = scalar_lea.vmem [#allocation8], %s1711_s23  ;;  %s2277_s13 = scalar_lea.hbm %s2672_s14, 8704 }
  0x75   : > { %s3394_s27 = scalar_select %p2789_p6, 1, 0 }
  0x76   : > { %p2798_p10 = pnand %p3395_p8, %p130_p0  ;;  %s243_s15 = sshll.u32 %s234_s18, 4  ;;  %s2802_s15 = int_to_ptr.vmem [resolvable:$true] %s243_s15 }
  0x77   : > { %p2248_p2 = scmp.ne.s32.totalorder %s2794_s8, %s2277_s13  ;;  %s2252_s10 = scalar_lea.hbm %s3337_s3, 49152 }
  0x78   : > { %p2249_p7 = pneg %p2798_p10  ;;  %p2253_p9 = scmp.lt.u32.totalorder %s2794_s8, %s3337_s3 }
  0x79   : > { %p2254_p3 = scmp.lt.u32.totalorder %s2252_s10, %s2277_s13  ;;  %p2256_p12 = scmp.lt.u32.totalorder %s2277_s13, %s2794_s8 }
  0x7a   : > { %p2250_p4 = pnand %p2249_p7, %p2248_p2 }
  0x7b   : > { %p2255_p1 = por %p2254_p3, %p2253_p9 }
  0x7c   : > { %p2251_p5 = pneg %p2250_p4 }
  0x7d   : > { %p2257_p0 = por %p2256_p12, %p2255_p1 }
  0x7f   : > { %p2258_p11 = pnand %p2257_p0, %p2251_p5 }
  0x81   : > { %2261 = shalt.err (!%p2258_p11)
}
  0x82   : > { %s2262_s14 = scalar_lea.vmem %s2802_s15, 8192  ;;  %s2464_s23 = smov [#allocation8]  }
  0x83   : > { %p2263_p8 = scmp.ne.s32.totalorder %s2802_s15, %s2262_s14  ;;  %s2267_s18 = sshll.u32 %s2464_s23, 4  ;;  %s2268_s18 = int_to_ptr.vmem [resolvable:$false] %s2267_s18 }
  0x84   : > { %s2269_s11 = scalar_lea.vmem %s2268_s18, 16384  ;;  %p2270_p6 = scmp.lt.s32.totalorder %s2802_s15, %s2268_s18 }
  0x85   : > { %p2265_p2 = pnand %p2263_p8, %p2249_p7  ;;  %p2271_p9 = scmp.lt.s32.totalorder %s2269_s11, %s2262_s14 }
  0x87   : > { %p2266_p4 = pneg %p2265_p2  ;;  %p2272_p3 = por %p2271_p9, %p2270_p6 }
  0x89   : > { %p2273_p1 = pnand %p2272_p3, %p2266_p4 }
  0x8b   : > { %2276 = shalt.err (!%p2273_p1)
}
  0x8c   : > { %s3397_s13 = smov 32   ;;  %s3398_s12 = smov 3072  }
  0x8d   : > { %2033 = dma.hbm_to_vmem [thread:$0]  (!%p2798_p10), %s2794_s8, 8192, %s2802_s15, %s2674_s21, %s3398_s12, %s3390_s22, %s3397_s13  }
  0x8e   : > { %255 = sbr.rel (%p2707_p13) target bundleno = 571 (0x23b), region = 36  ;;  %s257_s28 = sand.u32 (!%p2707_p13), 1, %s2432_s25  }
  0x8f   : > { %s1714_s10 = sshll.u32 (!%p2707_p13), %s257_s28, 6  ;;  %s258_s30 = scalar_lea.sflag (!%p2707_p13), [#allocation4], %s257_s28 }
  0x90   : > { %s2836_s14 = scalar_lea.vmem (!%p2707_p13), [#allocation3], %s1714_s10  ;;  %p3399_p6 = scmp.ne.s32.totalorder (!%p2707_p13), %s3387_s17, 0 }
  0x95   : > { %2375 = dma.done.wait (%p3399_p6), %s258_s30, 1024  }
  0x96   : > { %2377 = vsyncadd (%p3399_p6), %s258_s30, 4294966272  ;;  %s3400_s1 = sld [smem:[#allocation16_spill]]  ;;  %s3401_s23 = sld [smem:[#allocation23_spill]] }
  0x97   : > { %s266_s18 = sand.u32 1, %s2581_s6  }
  0x98   : > { %s267_s9 = scalar_lea.sflag [#allocation7], %s266_s18 }
  0x9c   : > { %s268_s21 = sand.u32 1, %s3400_s1   ;;  %p3402_p13 = scmp.ne.s32.totalorder %s3401_s23, 0 }
  0x9d   : > { %s1715_s22 = sshll.u32 %s268_s21, 9 }
  0x9e   : > { %s2844_s8 = scalar_lea.vmem [#allocation6], %s1715_s22 }
  0x9f   : > { %2379 = dma.done.wait (%p3402_p13), %s267_s9, 8192  }
  0xa0   : > { %2381 = vsyncadd (%p3402_p13), %s267_s9, 4294959104  ;;  %s277_s15 = sand.u32 1, %s2408_s19   ;;  %p3403_p10 = scmp.ne.s32.totalorder %s3394_s27, 0 }
  0xa1   : > { %s1716_s11 = sshll.u32 %s277_s15, 9 }
  0xa2   : > { %s2851_s17 = scalar_lea.vmem [#allocation8], %s1716_s11 }
  0xa3   : > { %2383 = dma.done.wait (%p3403_p10), %s267_s9, 8192  }
  0xa4   : > { %2385 = vsyncadd (%p3403_p10), %s267_s9, 4294959104  ;;  %s311_s6 = sand.u32 1, %s2396_s16   ;;  %s3404_s28 = sld [smem:[#allocation18_spill]] }
  0xa5   : > { %s1717_s13 = sshll.u32 %s311_s6, 6 }
  0xa6   : > { %s2860_s12 = scalar_lea.vmem [#allocation9], %s1717_s13 }
  0xaa   : > { %p1718_p7 = scmp.ne.s32.totalorder %s3404_s28, 0 }
  0xab   : > { %v2465_v0 = vmov (!%p1718_p7), 0.0  }
  0xac   : > { %324 = sbr.rel (%p1718_p7) target bundleno = 179 (0xb3), region = 52  ;;  %325 = vst [vmem:[%s2860_s12] sm:$0xff] (!%p1718_p7), %v2465_v0  ;;  %326 = vst [vmem:[%s2860_s12 + $0x8] sm:$0xff] (!%p1718_p7), %v2465_v0 }
  0xad   : > { %327 = vst [vmem:[%s2860_s12 + $0x10] sm:$0xff] (!%p1718_p7), %v2465_v0  ;;  %328 = vst [vmem:[%s2860_s12 + $0x18] sm:$0xff] (!%p1718_p7), %v2465_v0 }
  0xae   : > { %329 = vst [vmem:[%s2860_s12 + $0x20] sm:$0xff] (!%p1718_p7), %v2465_v0  ;;  %330 = vst [vmem:[%s2860_s12 + $0x28] sm:$0xff] (!%p1718_p7), %v2465_v0 }
  0xaf   : > { %331 = vst [vmem:[%s2860_s12 + $0x30] sm:$0xff] (!%p1718_p7), %v2465_v0  ;;  %332 = vst [vmem:[%s2860_s12 + $0x38] sm:$0xff] (!%p1718_p7), %v2465_v0 }
  0xb3 PF: > { %v334_v1 = vld [vmem:[%s2844_s8 + $0x8] sm:$0xff]  ;;  %v336_v3 = vld [vmem:[%s2844_s8 + $0x18] sm:$0xff]  ;;  %v333_v6 = vld [vmem:[%s2844_s8] sm:$0xff]  ;;  %v2466_v8 = vmov 0.0   ;;  %s3405_s27 = sld [smem:[#allocation18_spill]] }
  0xb4   : > { %v338_v2 = vld [vmem:[%s2844_s8 + $0x28] sm:$0xff]  ;;  %v340_v5 = vld [vmem:[%s2844_s8 + $0x38] sm:$0xff]  ;;  %v337_v7 = vld [vmem:[%s2844_s8 + $0x20] sm:$0xff]  ;;  %727 = vmatprep.mubr.f32.mxu0 %v2466_v8  ;;  %804 = vmatprep.mubr.f32.mxu1 %v2466_v8 }
  0xb5   : > { %v2874_v4 = vpack.c.bf16 %v338_v2, %v334_v1  ;;  %v2881_v9 = vpack.c.bf16 %v340_v5, %v336_v3  ;;  %v1730_v10 = vpack.c.bf16 %v337_v7, %v333_v6  ;;  %v335_v11 = vld [vmem:[%s2844_s8 + $0x10] sm:$0xff]  ;;  %v342_v13 = vld [vmem:[%s2844_s8 + $0x48] sm:$0xff]  ;;  %v344_v16 = vld [vmem:[%s2844_s8 + $0x58] sm:$0xff] }
  0xb6   : > { %v339_v12 = vld [vmem:[%s2844_s8 + $0x30] sm:$0xff]  ;;  %v346_v15 = vld [vmem:[%s2844_s8 + $0x68] sm:$0xff]  ;;  %v348_v17 = vld [vmem:[%s2844_s8 + $0x78] sm:$0xff] }
  0xb7   : > { %1729 = vmatprep.subr.bf16.mxu0 %v2874_v4  ;;  %v2887_v14 = vpack.c.bf16 %v339_v12, %v335_v11  ;;  %1761 = vmatprep.subr.bf16.mxu1 %v2881_v9  ;;  %v2893_v18 = vpack.c.bf16 %v346_v15, %v342_v13  ;;  %v2895_v19 = vpack.c.bf16 %v348_v17, %v344_v16  ;;  %v341_v20 = vld [vmem:[%s2844_s8 + $0x40] sm:$0xff]  ;;  %v343_v22 = vld [vmem:[%s2844_s8 + $0x50] sm:$0xff]  ;;  %v350_v25 = vld [vmem:[%s2844_s8 + $0x88] sm:$0xff] }
  0xb8   : > { %1731 = vmatpush1.bf16.msra.mxu0 %v1730_v10  ;;  %v345_v21 = vld [vmem:[%s2844_s8 + $0x60] sm:$0xff]  ;;  %v347_v24 = vld [vmem:[%s2844_s8 + $0x70] sm:$0xff]  ;;  %v354_v26 = vld [vmem:[%s2844_s8 + $0xa8] sm:$0xff] }
  0xb9   : > { %1763 = vmatpush1.bf16.msra.mxu1 %v2887_v14  ;;  %v1734_v23 = vpack.c.bf16 %v345_v21, %v341_v20  ;;  %1733 = vmatprep.subr.bf16.mxu0 %v2893_v18  ;;  %v2906_v27 = vpack.c.bf16 %v347_v24, %v343_v22  ;;  %v2908_v28 = vpack.c.bf16 %v354_v26, %v350_v25  ;;  %v352_v29 = vld [vmem:[%s2844_s8 + $0x98] sm:$0xff]  ;;  %v349_v31 = vld [vmem:[%s2844_s8 + $0x80] sm:$0xff]  ;;  %v351_v34 = vld [vmem:[%s2844_s8 + $0x90] sm:$0xff]  ;;  %p1719_p5 = scmp.ne.s32.totalorder %s3405_s27, 3 }
  0xba   : > { %1765 = vmatprep.subr.bf16.mxu1 %v2895_v19  ;;  %v356_v30 = vld [vmem:[%s2844_s8 + $0xb8] sm:$0xff]  ;;  %v353_v33 = vld [vmem:[%s2844_s8 + $0xa0] sm:$0xff]  ;;  %v355_v35 = vld [vmem:[%s2844_s8 + $0xb0] sm:$0xff] }
  0xbb   : > { %v2913_v32 = vpack.c.bf16 %v356_v30, %v352_v29  ;;  %v1738_v36 = vpack.c.bf16 %v353_v33, %v349_v31  ;;  %v358_v37 = vld [vmem:[%s2844_s8 + $0xc8] sm:$0xff]  ;;  %v360_v39 = vld [vmem:[%s2844_s8 + $0xd8] sm:$0xff]  ;;  %v2923_v40 = vpack.c.bf16 %v355_v35, %v351_v34  ;;  %v357_v43 = vld [vmem:[%s2844_s8 + $0xc0] sm:$0xff] }
  0xbc   : > { %1735 = vmatpush1.bf16.msra.mxu0 %v1734_v23  ;;  %v362_v38 = vld [vmem:[%s2844_s8 + $0xe8] sm:$0xff]  ;;  %v364_v42 = vld [vmem:[%s2844_s8 + $0xf8] sm:$0xff]  ;;  %v361_v44 = vld [vmem:[%s2844_s8 + $0xe0] sm:$0xff] }
  0xbd   : > { %1767 = vmatpush1.bf16.msra.mxu1 %v2906_v27  ;;  %1737 = vmatprep.subr.bf16.mxu0 %v2908_v28  ;;  %v2925_v41 = vpack.c.bf16 %v362_v38, %v358_v37  ;;  %v2931_v45 = vpack.c.bf16 %v364_v42, %v360_v39  ;;  %v359_v46 = vld [vmem:[%s2844_s8 + $0xd0] sm:$0xff]  ;;  %v366_v48 = vld [vmem:[%s2844_s8 + $0x108] sm:$0xff]  ;;  %v368_v50 = vld [vmem:[%s2844_s8 + $0x118] sm:$0xff]  ;;  %v1742_v52 = vpack.c.bf16 %v361_v44, %v357_v43 }
  0xbe   : > { %1769 = vmatprep.subr.bf16.mxu1 %v2913_v32  ;;  %v363_v47 = vld [vmem:[%s2844_s8 + $0xf0] sm:$0xff]  ;;  %v370_v49 = vld [vmem:[%s2844_s8 + $0x128] sm:$0xff]  ;;  %v372_v51 = vld [vmem:[%s2844_s8 + $0x138] sm:$0xff] }
  0xbf   : > { %v2941_v53 = vpack.c.bf16 %v363_v47, %v359_v46  ;;  %v2943_v54 = vpack.c.bf16 %v370_v49, %v366_v48  ;;  %v365_v55 = vld [vmem:[%s2844_s8 + $0x100] sm:$0xff]  ;;  %v367_v57 = vld [vmem:[%s2844_s8 + $0x110] sm:$0xff]  ;;  %v2949_v58 = vpack.c.bf16 %v372_v51, %v368_v50  ;;  %v374_v60 = vld [vmem:[%s2844_s8 + $0x148] sm:$0xff] }
  0xc0   : > { %1739 = vmatpush1.bf16.msra.mxu0 %v1738_v36  ;;  %v369_v56 = vld [vmem:[%s2844_s8 + $0x120] sm:$0xff]  ;;  %v371_v59 = vld [vmem:[%s2844_s8 + $0x130] sm:$0xff]  ;;  %v378_v61 = vld [vmem:[%s2844_s8 + $0x168] sm:$0xff] }
  0xc1   : > { %1771 = vmatpush1.bf16.msra.mxu1 %v2923_v40  ;;  %1741 = vmatprep.subr.bf16.mxu0 %v2925_v41  ;;  %v376_v62 = vld [vmem:[%s2844_s8 + $0x158] sm:$0xff]  ;;  %v1746_v0 = vpack.c.bf16 %v369_v56, %v365_v55  ;;  %v2958_v1 = vpack.c.bf16 %v371_v59, %v367_v57  ;;  %v2960_v2 = vpack.c.bf16 %v378_v61, %v374_v60  ;;  %v373_v3 = vld [vmem:[%s2844_s8 + $0x140] sm:$0xff]  ;;  %v375_v6 = vld [vmem:[%s2844_s8 + $0x150] sm:$0xff] }
  0xc2   : > { %1773 = vmatprep.subr.bf16.mxu1 %v2931_v45  ;;  %v380_v63 = vld [vmem:[%s2844_s8 + $0x178] sm:$0xff]  ;;  %v377_v5 = vld [vmem:[%s2844_s8 + $0x160] sm:$0xff]  ;;  %v379_v10 = vld [vmem:[%s2844_s8 + $0x170] sm:$0xff] }
  0xc3   : > { %v2966_v7 = vpack.c.bf16 %v380_v63, %v376_v62  ;;  %v382_v11 = vld [vmem:[%s2844_s8 + $0x188] sm:$0xff]  ;;  %v384_v13 = vld [vmem:[%s2844_s8 + $0x198] sm:$0xff]  ;;  %v1750_v16 = vpack.c.bf16 %v377_v5, %v373_v3  ;;  %v2975_v17 = vpack.c.bf16 %v379_v10, %v375_v6  ;;  %v381_v21 = vld [vmem:[%s2844_s8 + $0x180] sm:$0xff] }
  0xc4   : > { %1743 = vmatpush1.bf16.msra.mxu0 %v1742_v52  ;;  %v386_v12 = vld [vmem:[%s2844_s8 + $0x1a8] sm:$0xff]  ;;  %v388_v15 = vld [vmem:[%s2844_s8 + $0x1b8] sm:$0xff]  ;;  %v385_v22 = vld [vmem:[%s2844_s8 + $0x1a0] sm:$0xff] }
  0xc5   : > { %1775 = vmatpush1.bf16.msra.mxu1 %v2941_v53  ;;  %1745 = vmatprep.subr.bf16.mxu0 %v2943_v54  ;;  %v2977_v20 = vpack.c.bf16 %v386_v12, %v382_v11  ;;  %v383_v23 = vld [vmem:[%s2844_s8 + $0x190] sm:$0xff]  ;;  %v2983_v24 = vpack.c.bf16 %v388_v15, %v384_v13  ;;  %v390_v26 = vld [vmem:[%s2844_s8 + $0x1c8] sm:$0xff]  ;;  %v392_v30 = vld [vmem:[%s2844_s8 + $0x1d8] sm:$0xff]  ;;  %v1754_v33 = vpack.c.bf16 %v385_v22, %v381_v21 }
  0xc6   : > { %1777 = vmatprep.subr.bf16.mxu1 %v2949_v58  ;;  %v387_v25 = vld [vmem:[%s2844_s8 + $0x1b0] sm:$0xff]  ;;  %v394_v29 = vld [vmem:[%s2844_s8 + $0x1e8] sm:$0xff]  ;;  %v396_v31 = vld [vmem:[%s2844_s8 + $0x1f8] sm:$0xff] }
  0xc7   : > { %v2992_v34 = vpack.c.bf16 %v387_v25, %v383_v23  ;;  %v2994_v35 = vpack.c.bf16 %v394_v29, %v390_v26  ;;  %v389_v36 = vld [vmem:[%s2844_s8 + $0x1c0] sm:$0xff]  ;;  %v2999_v38 = vpack.c.bf16 %v396_v31, %v392_v30  ;;  %v391_v39 = vld [vmem:[%s2844_s8 + $0x1d0] sm:$0xff]  ;;  %v462_v12 = vld [vmem:[%s2851_s17 + $0x8] sm:$0xff] }
  0xc8   : > { %1747 = vmatpush1.bf16.msra.mxu0 %v1746_v0  ;;  %v393_v37 = vld [vmem:[%s2844_s8 + $0x1e0] sm:$0xff]  ;;  %v395_v42 = vld [vmem:[%s2844_s8 + $0x1f0] sm:$0xff]  ;;  %v466_v13 = vld [vmem:[%s2851_s17 + $0x28] sm:$0xff] }
  0xc9   : > { %1779 = vmatpush1.bf16.msra.mxu1 %v2958_v1  ;;  %1749 = vmatprep.subr.bf16.mxu0 %v2960_v2  ;;  %v461_v43 = vld [vmem:[%s2851_s17] sm:$0xff]  ;;  %v1758_v46 = vpack.c.bf16 %v393_v37, %v389_v36  ;;  %v3007_v47 = vpack.c.bf16 %v395_v42, %v391_v39  ;;  %v470_v15 = vld [vmem:[%s2851_s17 + $0x48] sm:$0xff] }
  0xca   : > { %1781 = vmatprep.subr.bf16.mxu1 %v2966_v7  ;;  %v465_v44 = vld [vmem:[%s2851_s17 + $0x20] sm:$0xff]  ;;  %v825_v21 = vld [vmem:[%s2836_s14 + $0x8] sm:$0xff] }
  0xcb   : > { %v3010_v48 = vpack.c.bf16 %v465_v44, %v461_v43  ;;  %v469_v49 = vld [vmem:[%s2851_s17 + $0x40] sm:$0xff]  ;;  %v478_v22 = vld [vmem:[%s2851_s17 + $0x88] sm:$0xff]  ;;  %v463_v44 = vld [vmem:[%s2851_s17 + $0x10] sm:$0xff] }
  0xcc   : > { %1751 = vmatpush1.bf16.msra.mxu0 %v1750_v16  ;;  %v473_v50 = vld [vmem:[%s2851_s17 + $0x60] sm:$0xff]  ;;  %v474_v16 = vld [vmem:[%s2851_s17 + $0x68] sm:$0xff] }
  0xcd   : > { %1783 = vmatpush1.bf16.msra.mxu1 %v2975_v17  ;;  %1753 = vmatprep.subr.bf16.mxu0 %v2977_v20  ;;  %v597_v51 = vld [vmem:[%s2836_s14] sm:$0xff]  ;;  %v3018_v52 = vpack.c.bf16 %v473_v50, %v469_v49  ;;  %v482_v23 = vld [vmem:[%s2851_s17 + $0xa8] sm:$0xff]  ;;  %v471_v49 = vld [vmem:[%s2851_s17 + $0x50] sm:$0xff] }
  0xce   : > { %1785 = vmatprep.subr.bf16.mxu1 %v2983_v24  ;;  %v477_v55 = vld [vmem:[%s2851_s17 + $0x80] sm:$0xff]  ;;  %v826_v25 = vld [vmem:[%s2836_s14 + $0x28] sm:$0xff]  ;;  %v3097_v26 = vpack.c.bf16 %v482_v23, %v478_v22  ;;  %v475_v50 = vld [vmem:[%s2851_s17 + $0x70] sm:$0xff] }
  0xcf   : > { %v481_v56 = vld [vmem:[%s2851_s17 + $0xa0] sm:$0xff]  ;;  %v486_v29 = vld [vmem:[%s2851_s17 + $0xc8] sm:$0xff] }
  0xd0   : > { %1755 = vmatpush1.bf16.msra.mxu0 %v1754_v33  ;;  %v598_v57 = vld [vmem:[%s2836_s14 + $0x20] sm:$0xff]  ;;  %v3027_v59 = vpack.c.bf16 %v481_v56, %v477_v55  ;;  %v490_v30 = vld [vmem:[%s2851_s17 + $0xe8] sm:$0xff]  ;;  %v479_v55 = vld [vmem:[%s2851_s17 + $0x90] sm:$0xff] }
  0xd1   : > { %1787 = vmatpush1.bf16.msra.mxu1 %v2992_v34  ;;  %1757 = vmatprep.subr.bf16.mxu0 %v2994_v35  ;;  %v485_v60 = vld [vmem:[%s2851_s17 + $0xc0] sm:$0xff]  ;;  %v494_v31 = vld [vmem:[%s2851_s17 + $0x108] sm:$0xff]  ;;  %v483_v56 = vld [vmem:[%s2851_s17 + $0xb0] sm:$0xff] }
  0xd2   : > { %1789 = vmatprep.subr.bf16.mxu1 %v2999_v38  ;;  %v489_v61 = vld [vmem:[%s2851_s17 + $0xe0] sm:$0xff]  ;;  %v498_v33 = vld [vmem:[%s2851_s17 + $0x128] sm:$0xff] }
  0xd3   : > { %v493_v62 = vld [vmem:[%s2851_s17 + $0x100] sm:$0xff]  ;;  %v506_v36 = vld [vmem:[%s2851_s17 + $0x168] sm:$0xff] }
  0xd4   : > { %1759 = vmatpush1.bf16.msra.mxu0 %v1758_v46  ;;  %v497_v63 = vld [vmem:[%s2851_s17 + $0x120] sm:$0xff]  ;;  %v510_v37 = vld [vmem:[%s2851_s17 + $0x188] sm:$0xff]  ;;  %v467_v46 = vld [vmem:[%s2851_s17 + $0x30] sm:$0xff] }
  0xd5   : > { %1791 = vmatpush1.bf16.msra.mxu1 %v3007_v47  ;;  %1793 = vmatprep.subr.bf16.mxu0 %v2887_v14  ;;  %v501_v0 = vld [vmem:[%s2851_s17 + $0x140] sm:$0xff]  ;;  %v514_v39 = vld [vmem:[%s2851_s17 + $0x1a8] sm:$0xff] }
  0xd6   : > { %1825 = vmatprep.subr.bf16.mxu1 %v3010_v48  ;;  %v505_v3 = vld [vmem:[%s2851_s17 + $0x160] sm:$0xff]  ;;  %v518_v42 = vld [vmem:[%s2851_s17 + $0x1c8] sm:$0xff] }
  0xd7   : > { %728 = vmatmul.mubr.f32.vlgmr.msra.gmra.mrb[0].mxu0 %v597_v51  ;;  %v509_v5 = vld [vmem:[%s2851_s17 + $0x180] sm:$0xff]  ;;  %v522_v43 = vld [vmem:[%s2851_s17 + $0x1e8] sm:$0xff] }
  0xd8   : > { %805 = vmatmul.mubr.f32.vlgmr.msra.gmra.mrb[0].mxu1 %v597_v51  ;;  %1795 = vmatpush1.bf16.msra.mxu0 %v2874_v4  ;;  %v3037_v4 = vpack.c.bf16 %v489_v61, %v485_v60  ;;  %v513_v6 = vld [vmem:[%s2851_s17 + $0x1a0] sm:$0xff]  ;;  %v1053_v51 = vld [vmem:[%s2836_s14 + $0x10] sm:$0xff] }
  0xd9   : > { %1827 = vmatpush1.bf16.msra.mxu1 %v2881_v9  ;;  %1797 = vmatprep.subr.bf16.mxu0 %v2906_v27  ;;  %v517_v10 = vld [vmem:[%s2851_s17 + $0x1c0] sm:$0xff]  ;;  %v491_v60 = vld [vmem:[%s2851_s17 + $0xf0] sm:$0xff] }
  0xda   : > { %1829 = vmatprep.subr.bf16.mxu1 %v3018_v52  ;;  %733 = vmatprep.mubr.f32.mxu0 %v2466_v8  ;;  %v521_v11 = vld [vmem:[%s2851_s17 + $0x1e0] sm:$0xff]  ;;  %v499_v61 = vld [vmem:[%s2851_s17 + $0x130] sm:$0xff] }
  0xdb   : > { %810 = vmatprep.mubr.f32.mxu1 %v2466_v8  ;;  %734 = vmatmul.mubr.f32.gmra.mrb[2].mxu0 %v598_v57 }
  0xdc   : > { %1799 = vmatpush1.bf16.msra.mxu0 %v2893_v18  ;;  %811 = vmatmul.mubr.f32.gmra.mrb[2].mxu1 %v598_v57  ;;  %v3047_v18 = vpack.c.bf16 %v497_v63, %v493_v62  ;;  %v1054_v57 = vld [vmem:[%s2836_s14 + $0x30] sm:$0xff] }
  0xdd   : > { %1831 = vmatpush1.bf16.msra.mxu1 %v2895_v19  ;;  %1801 = vmatprep.subr.bf16.mxu0 %v2923_v40  ;;  %v507_v62 = vld [vmem:[%s2851_s17 + $0x170] sm:$0xff] }
  0xde   : > { %1833 = vmatprep.subr.bf16.mxu1 %v3027_v59  ;;  %955 = vmatprep.mubr.f32.mxu0 %v2466_v8 }
  0xdf   : > { %1032 = vmatprep.mubr.f32.mxu1 %v2466_v8 }
  0xe0   : > { %1803 = vmatpush1.bf16.msra.mxu0 %v2908_v28  ;;  %v3055_v28 = vpack.c.bf16 %v505_v3, %v501_v0  ;;  %v511_v0 = vld [vmem:[%s2851_s17 + $0x190] sm:$0xff] }
  0xe1   : > { %1835 = vmatpush1.bf16.msra.mxu1 %v2913_v32  ;;  %1805 = vmatprep.subr.bf16.mxu0 %v2941_v53  ;;  %v519_v3 = vld [vmem:[%s2851_s17 + $0x1d0] sm:$0xff] }
  0xe2   : > { %1837 = vmatprep.subr.bf16.mxu1 %v3037_v4 }
  0xe4   : > { %1807 = vmatpush1.bf16.msra.mxu0 %v2925_v41  ;;  %v3063_v41 = vpack.c.bf16 %v513_v6, %v509_v5  ;;  %v523_v5 = vld [vmem:[%s2851_s17 + $0x1f0] sm:$0xff]  ;;  %v592_v6 = vld [vmem:[%s2860_s12 + $0x18] sm:$0xff] }
  0xe5   : > { %1839 = vmatpush1.bf16.msra.mxu1 %v2931_v45  ;;  %1809 = vmatprep.subr.bf16.mxu0 %v2958_v1 }
  0xe6   : > { %1841 = vmatprep.subr.bf16.mxu1 %v3047_v18 }
  0xe8   : > { %1811 = vmatpush1.bf16.msra.mxu0 %v2943_v54  ;;  %v3071_v54 = vpack.c.bf16 %v521_v11, %v517_v10 }
  0xe9   : > { %1843 = vmatpush1.bf16.msra.mxu1 %v2949_v58  ;;  %1813 = vmatprep.subr.bf16.mxu0 %v2975_v17 }
  0xea   : > { %1845 = vmatprep.subr.bf16.mxu1 %v3055_v28 }
  0xec   : > { %1815 = vmatpush1.bf16.msra.mxu0 %v2960_v2  ;;  %v3079_v2 = vpack.c.bf16 %v466_v13, %v462_v12 }
  0xed   : > { %1847 = vmatpush1.bf16.msra.mxu1 %v2966_v7  ;;  %1817 = vmatprep.subr.bf16.mxu0 %v2992_v34 }
  0xee   : > { %1849 = vmatprep.subr.bf16.mxu1 %v3063_v41 }
  0xf0   : > { %1819 = vmatpush1.bf16.msra.mxu0 %v2977_v20  ;;  %v3088_v20 = vpack.c.bf16 %v474_v16, %v470_v15  ;;  %v595_v15 = vld [vmem:[%s2860_s12 + $0x30] sm:$0xff]  ;;  %v594_v16 = vld [vmem:[%s2860_s12 + $0x28] sm:$0xff] }
  0xf1   : > { %1851 = vmatpush1.bf16.msra.mxu1 %v2983_v24  ;;  %1821 = vmatprep.subr.bf16.mxu0 %v3007_v47 }
  0xf2   : > { %1853 = vmatprep.subr.bf16.mxu1 %v3071_v54 }
  0xf4   : > { %1823 = vmatpush1.bf16.msra.mxu0 %v2994_v35  ;;  %v502_v35 = vld [vmem:[%s2851_s17 + $0x148] sm:$0xff] }
  0xf5   : > { %1855 = vmatpush1.bf16.msra.mxu1 %v2999_v38  ;;  %1857 = vmatprep.subr.bf16.mxu0 %v2881_v9 }
  0xf6   : > { %1889 = vmatprep.subr.bf16.mxu1 %v3079_v2 }
  0xf7   : > { %956 = vmatmul.mubr.f32.vlgmr.msra.gmra.mrb[0].mxu0 %v825_v21 }
  0xf8   : > { %1033 = vmatmul.mubr.f32.vlgmr.msra.gmra.mrb[0].mxu1 %v825_v21  ;;  %1859 = vmatpush1.bf16.msra.mxu0 %v2887_v14  ;;  %v3107_v14 = vpack.c.bf16 %v490_v30, %v486_v29 }
  0xf9   : > { %1891 = vmatpush1.bf16.msra.mxu1 %v3010_v48  ;;  %1861 = vmatprep.subr.bf16.mxu0 %v2895_v19 }
  0xfa   : > { %1893 = vmatprep.subr.bf16.mxu1 %v3088_v20  ;;  %961 = vmatprep.mubr.f32.mxu0 %v2466_v8 }
  0xfb   : > { %1038 = vmatprep.mubr.f32.mxu1 %v2466_v8  ;;  %962 = vmatmul.mubr.f32.gmra.mrb[2].mxu0 %v826_v25 }
  0xfc   : > { %1863 = vmatpush1.bf16.msra.mxu0 %v2906_v27  ;;  %1039 = vmatmul.mubr.f32.gmra.mrb[2].mxu1 %v826_v25  ;;  %v3117_v27 = vpack.c.bf16 %v498_v33, %v494_v31  ;;  %v2467_v33 = vmov (!%p1719_p5), 0  }
  0xfd   : > { %1895 = vmatpush1.bf16.msra.mxu1 %v3018_v52  ;;  %1865 = vmatprep.subr.bf16.mxu0 %v2913_v32 }
  0xfe   : > { %1897 = vmatprep.subr.bf16.mxu1 %v3097_v26  ;;  %1183 = vmatprep.mubr.f32.mxu0 %v2466_v8 }
  0xff   : > { %1260 = vmatprep.mubr.f32.mxu1 %v2466_v8  ;;  %2186 = vset.pattern.permute.xlu0 (!%p1719_p5), %v2467_v33 }
 0x100   : > { %1867 = vmatpush1.bf16.msra.mxu0 %v2923_v40  ;;  %v3125_v40 = vpack.c.bf16 %v506_v36, %v502_v35 }
 0x101   : > { %1899 = vmatpush1.bf16.msra.mxu1 %v3027_v59  ;;  %1869 = vmatprep.subr.bf16.mxu0 %v2931_v45 }
 0x102   : > { %1901 = vmatprep.subr.bf16.mxu1 %v3107_v14 }
 0x104   : > { %1871 = vmatpush1.bf16.msra.mxu0 %v2941_v53  ;;  %v3133_v53 = vpack.c.bf16 %v514_v39, %v510_v37 }
 0x105   : > { %1903 = vmatpush1.bf16.msra.mxu1 %v3037_v4  ;;  %1873 = vmatprep.subr.bf16.mxu0 %v2949_v58 }
 0x106   : > { %1905 = vmatprep.subr.bf16.mxu1 %v3117_v27 }
 0x108   : > { %1875 = vmatpush1.bf16.msra.mxu0 %v2958_v1  ;;  %v3141_v1 = vpack.c.bf16 %v522_v43, %v518_v42 }
 0x109   : > { %1907 = vmatpush1.bf16.msra.mxu1 %v3047_v18  ;;  %1877 = vmatprep.subr.bf16.mxu0 %v2966_v7 }
 0x10a   : > { %1909 = vmatprep.subr.bf16.mxu1 %v3125_v40 }
 0x10c   : > { %1879 = vmatpush1.bf16.msra.mxu0 %v2975_v17  ;;  %v1952_v17 = vpack.c.bf16 %v467_v46, %v463_v44 }
 0x10d   : > { %1911 = vmatpush1.bf16.msra.mxu1 %v3055_v28  ;;  %1881 = vmatprep.subr.bf16.mxu0 %v2983_v24 }
 0x10e   : > { %1913 = vmatprep.subr.bf16.mxu1 %v3133_v53 }
 0x110   : > { %1883 = vmatpush1.bf16.msra.mxu0 %v2992_v34  ;;  %v1956_v34 = vpack.c.bf16 %v475_v50, %v471_v49 }
 0x111   : > { %1915 = vmatpush1.bf16.msra.mxu1 %v3063_v41  ;;  %1885 = vmatprep.subr.bf16.mxu0 %v2999_v38 }
 0x112   : > { %1917 = vmatprep.subr.bf16.mxu1 %v3141_v1 }
 0x114   : > { %1887 = vmatpush1.bf16.msra.mxu0 %v3007_v47  ;;  %v1960_v47 = vpack.c.bf16 %v483_v56, %v479_v55 }
 0x115   : > { %1919 = vmatpush1.bf16.msra.mxu1 %v3071_v54  ;;  %1921 = vmatprep.subr.bf16.mxu0 %v3010_v48  ;;  %v487_v48 = vld [vmem:[%s2851_s17 + $0xd0] sm:$0xff] }
 0x116   : > { %1953 = vmatprep.subr.bf16.mxu1 %v1952_v17 }
 0x117   : > { %1184 = vmatmul.mubr.f32.vlgmr.msra.gmra.mrb[0].mxu0 %v1053_v51 }
 0x118   : > { %1261 = vmatmul.mubr.f32.vlgmr.msra.gmra.mrb[0].mxu1 %v1053_v51  ;;  %1923 = vmatpush1.bf16.msra.mxu0 %v2881_v9  ;;  %v1964_v9 = vpack.c.bf16 %v491_v60, %v487_v48 }
 0x119   : > { %1955 = vmatpush1.bf16.msra.mxu1 %v3079_v2  ;;  %1925 = vmatprep.subr.bf16.mxu0 %v3018_v52  ;;  %v495_v52 = vld [vmem:[%s2851_s17 + $0x110] sm:$0xff] }
 0x11a   : > { %1957 = vmatprep.subr.bf16.mxu1 %v1956_v34  ;;  %1189 = vmatprep.mubr.f32.mxu0 %v2466_v8 }
 0x11b   : > { %1266 = vmatprep.mubr.f32.mxu1 %v2466_v8  ;;  %1190 = vmatmul.mubr.f32.gmra.mrb[2].mxu0 %v1054_v57 }
 0x11c   : > { %1927 = vmatpush1.bf16.msra.mxu0 %v2895_v19  ;;  %1267 = vmatmul.mubr.f32.gmra.mrb[2].mxu1 %v1054_v57  ;;  %v1968_v19 = vpack.c.bf16 %v499_v61, %v495_v52 }
 0x11d   : > { %1959 = vmatpush1.bf16.msra.mxu1 %v3088_v20  ;;  %1929 = vmatprep.subr.bf16.mxu0 %v3027_v59  ;;  %v503_v59 = vld [vmem:[%s2851_s17 + $0x150] sm:$0xff]  ;;  %v596_v20 = vld [vmem:[%s2860_s12 + $0x38] sm:$0xff] }
 0x11e   : > { %1961 = vmatprep.subr.bf16.mxu1 %v1960_v47  ;;  %1411 = vmatprep.mubr.f32.mxu0 %v2466_v8  ;;  %v1972_v63 = vpack.c.bf16 %v507_v62, %v503_v59 }
 0x11f   : > { %1488 = vmatprep.mubr.f32.mxu1 %v2466_v8 }
 0x120   : > { %1931 = vmatpush1.bf16.msra.mxu0 %v2913_v32  ;;  %v515_v32 = vld [vmem:[%s2851_s17 + $0x1b0] sm:$0xff] }
 0x121   : > { %1963 = vmatpush1.bf16.msra.mxu1 %v3097_v26  ;;  %1933 = vmatprep.subr.bf16.mxu0 %v3037_v4  ;;  %v1976_v4 = vpack.c.bf16 %v515_v32, %v511_v0 }
 0x122   : > { %1965 = vmatprep.subr.bf16.mxu1 %v1964_v9 }
 0x124   : > { %1935 = vmatpush1.bf16.msra.mxu0 %v2931_v45  ;;  %v1980_v45 = vpack.c.bf16 %v523_v5, %v519_v3 }
 0x125   : > { %1967 = vmatpush1.bf16.msra.mxu1 %v3107_v14  ;;  %1937 = vmatprep.subr.bf16.mxu0 %v3047_v18  ;;  %v591_v18 = vld [vmem:[%s2860_s12 + $0x10] sm:$0xff] }
 0x126   : > { %1969 = vmatprep.subr.bf16.mxu1 %v1968_v19 }
 0x128   : > { %1939 = vmatpush1.bf16.msra.mxu0 %v2949_v58  ;;  %v1281_v58 = vld [vmem:[%s2836_s14 + $0x18] sm:$0xff] }
 0x129   : > { %1971 = vmatpush1.bf16.msra.mxu1 %v3117_v27  ;;  %1941 = vmatprep.subr.bf16.mxu0 %v3055_v28 }
 0x12a   : > { %1973 = vmatprep.subr.bf16.mxu1 %v1972_v63 }
 0x12c   : > { %1943 = vmatpush1.bf16.msra.mxu0 %v2966_v7  ;;  %v1282_v7 = vld [vmem:[%s2836_s14 + $0x38] sm:$0xff]  ;;  %s3406_s14 = sld [smem:[#allocation27_spill]] (!%p1719_p5) }
 0x12d   : > { %1975 = vmatpush1.bf16.msra.mxu1 %v3125_v40  ;;  %1945 = vmatprep.subr.bf16.mxu0 %v3063_v41 }
 0x12e   : > { %1977 = vmatprep.subr.bf16.mxu1 %v1976_v4 }
 0x130   : > { %1947 = vmatpush1.bf16.msra.mxu0 %v2983_v24  ;;  %v589_v24 = vld [vmem:[%s2860_s12] sm:$0xff] }
 0x131   : > { %1979 = vmatpush1.bf16.msra.mxu1 %v3133_v53  ;;  %1949 = vmatprep.subr.bf16.mxu0 %v3071_v54 }
 0x132   : > { %1981 = vmatprep.subr.bf16.mxu1 %v1980_v45  ;;  %v1529_v31 = vld [vmem:[%s3406_s14] sm:$0xff] (!%p1719_p5)  ;;  %v1530_v27 = vld [vmem:[%s3406_s14 + $0x8] sm:$0xff] (!%p1719_p5) }
 0x133   : > { %1533 = vperm.xlu0 (!%p1719_p5), %2186, %v1529_v31  }
 0x134   : > { %1951 = vmatpush1.bf16.msra.mxu0 %v2999_v38  ;;  %v590_v38 = vld [vmem:[%s2860_s12 + $0x8] sm:$0xff] }
 0x135   : > { %1983 = vmatpush1.bf16.msra.mxu1 %v3141_v1 }
 0x137   : > { %1412 = vmatmul.mubr.f32.vlgmr.msra.gmra.mrb[0].mxu0 %v1281_v58  ;;  %1538 = vperm.xlu0 (!%p1719_p5), %2186, %v1530_v27  }
 0x138   : > { %1489 = vmatmul.mubr.f32.vlgmr.msra.gmra.mrb[0].mxu1 %v1281_v58  ;;  %1417 = vmatprep.mubr.f32.mxu0 %v2466_v8 }
 0x139   : > { %1494 = vmatprep.mubr.f32.mxu1 %v2466_v8  ;;  %v593_v8 = vld [vmem:[%s2860_s12 + $0x20] sm:$0xff] }
 0x13b   : > { %1418 = vmatmul.mubr.f32.gmra.mrb[2].mxu0 %v1282_v7 }
 0x13c   : > { %1495 = vmatmul.mubr.f32.gmra.mrb[2].mxu1 %v1282_v7 }
 0x1b2   : > { %v1534_v39 = vpop.permute.xlu0 (!%p1719_p5), %1533 }
 0x1b6   : > { %v1539_v50 = vpop.permute.xlu0 (!%p1719_p5), %1538 }
 0x20a   : > { %v1413_v28 = vpop.f32.mrb[0].mxu0 }
 0x20b   : > { %v1984_v41 = vadd.f32 %v1413_v28, %v589_v24  ;;  %v1490_v10 = vpop.f32.mrb[0].mxu1  ;;  %v1415_v11 = vpop.f32.mrb[1].mxu0 }
 0x20c   : > { %v1988_v54 = vadd.f32 %v1490_v10, %v591_v18  ;;  %v1985_v12 = vadd.f32 %v1415_v11, %v590_v38  ;;  %v1492_v13 = vpop.f32.mrb[1].mxu1 }
 0x20d   : > { %1509 = vst [vmem:[%s2860_s12] sm:$0xff] %v1984_v41  ;;  %v1989_v2 = vadd.f32 %v1492_v13, %v592_v6  ;;  %1520 = sbr.rel (%p1719_p5) target bundleno = 542 (0x21e), region = 56 }
 0x20e   : > { %1511 = vst [vmem:[%s2860_s12 + $0x10] sm:$0xff] %v1988_v54  ;;  %1510 = vst [vmem:[%s2860_s12 + $0x8] sm:$0xff] %v1985_v12  ;;  %v1419_v21 = vpop.f32.mrb[2].mxu0 }
 0x20f   : > { %1512 = vst [vmem:[%s2860_s12 + $0x18] sm:$0xff] %v1989_v2  ;;  %v1986_v22 = vadd.f32 %v1419_v21, %v593_v8  ;;  %v1496_v23 = vpop.f32.mrb[2].mxu1  ;;  %v1421_v25 = vpop.f32.mrb[3].mxu0 }
 0x210   : > { %v1990_v26 = vadd.f32 %v1496_v23, %v595_v15  ;;  %v1987_v29 = vadd.f32 %v1421_v25, %v594_v16  ;;  %v1498_v30 = vpop.f32.mrb[3].mxu1 }
 0x211   : > { %1513 = vst [vmem:[%s2860_s12 + $0x20] sm:$0xff] %v1986_v22  ;;  %v1991_v14 = vadd.f32 %v1498_v30, %v596_v20 }
 0x212   : > { %1515 = vst [vmem:[%s2860_s12 + $0x30] sm:$0xff] %v1990_v26  ;;  %1514 = vst [vmem:[%s2860_s12 + $0x28] sm:$0xff] %v1987_v29 }
 0x213   : > { %1516 = vst [vmem:[%s2860_s12 + $0x38] sm:$0xff] %v1991_v14 }
 0x214   : > { %v1521_v35 = vld [vmem:[%s2860_s12] sm:$0xff] }
 0x215   : > { %v1522_v36 = vld [vmem:[%s2860_s12 + $0x8] sm:$0xff]  ;;  %v1523_v40 = vld [vmem:[%s2860_s12 + $0x10] sm:$0xff]  ;;  %v1541_v53 = vmul.f32 %v1534_v39, %v1521_v35 }
 0x216   : > { %v1524_v37 = vld [vmem:[%s2860_s12 + $0x18] sm:$0xff]  ;;  %v1542_v42 = vmul.f32 %v1534_v39, %v1522_v36  ;;  %v1543_v43 = vmul.f32 %v1534_v39, %v1523_v40 }
 0x217   : > { %v1544_v1 = vmul.f32 %v1534_v39, %v1524_v37  ;;  %1549 = vst [vmem:[%s2860_s12] sm:$0xff] %v1541_v53 }
 0x218   : > { %v1525_v44 = vld [vmem:[%s2860_s12 + $0x20] sm:$0xff]  ;;  %1550 = vst [vmem:[%s2860_s12 + $0x8] sm:$0xff] %v1542_v42  ;;  %1551 = vst [vmem:[%s2860_s12 + $0x10] sm:$0xff] %v1543_v43 }
 0x219   : > { %v1526_v46 = vld [vmem:[%s2860_s12 + $0x28] sm:$0xff]  ;;  %v1527_v17 = vld [vmem:[%s2860_s12 + $0x30] sm:$0xff]  ;;  %1552 = vst [vmem:[%s2860_s12 + $0x18] sm:$0xff] %v1544_v1  ;;  %v1545_v51 = vmul.f32 %v1539_v50, %v1525_v44 }
 0x21a   : > { %v1528_v49 = vld [vmem:[%s2860_s12 + $0x38] sm:$0xff]  ;;  %v1546_v34 = vmul.f32 %v1539_v50, %v1526_v46  ;;  %v1547_v55 = vmul.f32 %v1539_v50, %v1527_v17 }
 0x21b   : > { %v1548_v56 = vmul.f32 %v1539_v50, %v1528_v49  ;;  %1553 = vst [vmem:[%s2860_s12 + $0x20] sm:$0xff] %v1545_v51 }
 0x21c   : > { %1554 = vst [vmem:[%s2860_s12 + $0x28] sm:$0xff] %v1546_v34  ;;  %1555 = vst [vmem:[%s2860_s12 + $0x30] sm:$0xff] %v1547_v55 }
 0x21d   : > { %1556 = vst [vmem:[%s2860_s12 + $0x38] sm:$0xff] %v1548_v56 }
 0x21e PF: > { %s3407_s18 = sld [smem:[#allocation19_spill]]  ;;  %s3408_s8 = sld [smem:[#allocation28_spill]] }
 0x21f   : > { %s1571_s11 = sshll.u32 %s2860_s12, 4  ;;  %s3249_s17 = scalar_lea.sflag [#allocation5], %s311_s6  ;;  %s3245_s11 = int_to_ptr.vmem [resolvable:$true] %s1571_s11 }
 0x220   : > { %s2278_s13 = scalar_lea.vmem %s3245_s11, 1024  ;;  %p3409_p0 = scmp.ne.s32.totalorder %s3379_s7, 0 }
 0x221   : > { %p2279_p12 = scmp.ne.s32.totalorder %s3245_s11, %s2278_s13  ;;  %s2468_s28 = smov [#allocation9]  }
 0x222   : > { %s2282_s27 = sshll.u32 %s2468_s28, 4  ;;  %s2283_s27 = int_to_ptr.vmem [resolvable:$false] %s2282_s27 }
 0x223   : > { %p2280_p11 = pnand %p2279_p12, %p3409_p0  ;;  %s2284_s10 = scalar_lea.vmem %s2283_s27, 2048 }
 0x224   : > { %s1727_s21 = sshll.u32 %s3407_s18, 9  ;;  %p2285_p2 = scmp.lt.s32.totalorder %s3245_s11, %s2283_s27 }
 0x225   : > { %s3242_s15 = scalar_lea.hbm %s3408_s8, %s1727_s21  ;;  %p2281_p8 = pneg %p2280_p11 }
 0x226   : > { %p2286_p4 = scmp.lt.s32.totalorder %s2284_s10, %s2278_s13 }
 0x228   : > { %p2287_p9 = por %p2286_p4, %p2285_p2 }
 0x22a   : > { %p2288_p3 = pnand %p2287_p9, %p2281_p8 }
 0x22c   : > { %2291 = shalt.err (!%p2288_p3)
}
 0x22d   : > { %s2292_s6 = scalar_lea.hbm %s3242_s15, 1024  ;;  %s2296_s1 = scalar_lea.hbm %s3408_s8, 2048 }
 0x22e   : > { %p2293_p1 = scmp.ne.s32.totalorder %s3242_s15, %s2292_s6  ;;  %p2297_p10 = scmp.lt.u32.totalorder %s3242_s15, %s3408_s8 }
 0x22f   : > { %p2298_p7 = scmp.lt.u32.totalorder %s2296_s1, %s2292_s6  ;;  %p2300_p12 = scmp.lt.u32.totalorder %s2292_s6, %s3242_s15 }
 0x230   : > { %p2294_p6 = pnand %p2293_p1, %p3409_p0 }
 0x231   : > { %p2299_p5 = por %p2298_p7, %p2297_p10 }
 0x232   : > { %p2295_p13 = pneg %p2294_p6 }
 0x233   : > { %p2301_p11 = por %p2300_p12, %p2299_p5 }
 0x235   : > { %p2302_p8 = pnand %p2301_p11, %p2295_p13 }
 0x237   : > { %2305 = shalt.err (!%p2302_p8)
}
 0x238   : > { %s2469_s21 = smov 512   ;;  %s2470_s22 = smov 1024  }
 0x239   : > { %s2471_s9 = smov 32  }
 0x23a   : > { %2022 = dma.vmem_to_hbm [thread:$0]  (%p3409_p0), %s3245_s11, 1024, %s3242_s15, %s3249_s17, %s2469_s21, %s2470_s22, %s2471_s9  }
 0x23b PF: > { %s3410_s13 = sld [smem:[#allocation14_spill]]  ;;  %s3411_s28 = sld [smem:[#allocation26_spill]] }
 0x23c   : > { %p2039_p2 = scmp.ge.s32.totalorder %s2456_s5, 2 }
 0x241   : > { %s1586_s27 = sand.u32 1, %s3410_s13   ;;  %p3412_p4 = scmp.ne.s32.totalorder %s3411_s28, 0 }
 0x242   : > { %s1587_s10 = scalar_lea.sflag [#allocation5], %s1586_s27 }
 0x243   : > { %p2035_p9 = pnand %p2039_p2, %p3412_p4 }
 0x245   : > { %2387 = dma.done.wait (!%p2035_p9), %s1587_s10, 1024  }
 0x246   : > { %2389 = vsyncadd (!%p2035_p9), %s1587_s10, 4294966272  ;;  %s23_s5 = sadd.s32 1, %s2456_s5   ;;  %s3414_s7 = sld [smem:[#allocation15_spill]] }
 0x247   : > { %p3278_p3 = scmp.ge.s32.totalorder %s23_s5, 10   ;;  %s3415_s17 = sld [smem:[#allocation25_spill]] }
 0x248   : > { %s3416_s21 = sld [smem:[#allocation16_spill]]  ;;  %s3417_s22 = sld [smem:[#allocation17_spill]] }
 0x249   : > { %s3418_s23 = sld [smem:[#allocation24_spill]]  ;;  %s3419_s28 = sld [smem:[#allocation20_spill]] }
 0x24a   : > { %s3420_s11 = sld [smem:[#allocation21_spill]]  ;;  %s3421_s30 = sld [smem:[#allocation22_spill]] }
 0x24b   : > { %s3422_s15 = smov %s2396_s16  ;;  %s3424_s18 = smov %s2408_s19 }
 0x24c   : > { %s3423_s16 = smov %s3414_s7  ;;  %s3425_s19 = smov %s2412_s20 }
 0x24d   : > { %s3426_s20 = smov %s2778_s24  ;;  %s3427_s24 = smov %s2432_s25 }
 0x24e   : > { %s3428_s25 = smov %s2436_s26  ;;  %s3429_s26 = smov %s2715_s4 }
 0x24f   : > { %s3430_s27 = smov %s2448_s29  ;;  %22 = sbr.rel (!%p3278_p3) target bundleno = 17 (0x11), region = 113 }
 0x250   : > { %s3431_s29 = smov %s3420_s11 }
 0x256   :  { %1592 = vsyncpa [#allocation4], 1 }
 0x257   :  { %1594 = vsyncpa [#allocation4 + $0x1], 1 }
 0x258   :  { %1595 = vsyncpa [#allocation7], 1 }
 0x259   :  { %1597 = vsyncpa [#allocation7 + $0x1], 1 }
 0x25a   :  { %1598 = vsyncpa [#allocation5], 1 }
 0x25b   :  { %1600 = vsyncpa [#allocation5 + $0x1], 1 }

</bundles_post_ra>
